<compile_context>
chip_gen: v7x
topology: tpu7x:2x2x1
jax: 0.10.0
libtpu: 0.0.40
codegen_flags: <defaults>
</compile_context>

<pallas_src>
import functools

import jax
import jax.numpy as jnp
from jax import lax
from jax.experimental import pallas as pl
from jax.experimental.pallas import tpu as pltpu

LANES = 128
SUBLANES = 8
CHUNK_ROWS = 256                       # rows per inner fori_loop step (bounds VMEM temporaries)
TARGET_BLOCK_BYTES = 2 * 1024 * 1024   # HBM bytes per input per grid step (~roofline tiles)
VMEM_LIMIT_BYTES = 32 * 1024 * 1024    # explicit: > v5e 16 MiB default, <= v7x physical VMEM
SENTINEL_LOGIT = -100.0                # sigmoid -> 0, BCE -> ~0 (with target 0): contributes ~0


def _round_up(a, b):
    return ((a + b - 1) // b) * b


def _combo_stats_kernel(x_ref, t_ref, out_ref, *, rows_total, block_rows,
                        tiles_per_group, needs_mask):
    """Accumulate [sum(bce), sum(p*t), sum(p), sum(t)] into a resident (4,8,128) f32 block."""
    g = pl.program_id(0)
    ti = pl.program_id(1)

    @pl.when(ti == 0)
    def _init():
        out_ref[...] = jnp.zeros_like(out_ref)

    tile = g * tiles_per_group + ti            # un-clamped global tile index
    base_row = tile * block_rows
    num_chunks = block_rows // CHUNK_ROWS

    def fold(v):  # (CHUNK_ROWS, 128) -> (8, 128); pure vreg adds, no cross-lane work
        return v.reshape(-1, SUBLANES, LANES).sum(axis=0)

    def accumulate(masked):
        def body(c, carry):
            bce_a, pt_a, p_a, t_a = carry
            r0 = pl.multiple_of(c * CHUNK_ROWS, CHUNK_ROWS)
            x = x_ref[pl.ds(r0, CHUNK_ROWS), :].astype(jnp.float32)
            t = t_ref[pl.ds(r0, CHUNK_ROWS), :].astype(jnp.float32)
            if masked:
                row = (base_row + r0
                       + lax.broadcasted_iota(jnp.int32, (CHUNK_ROWS, LANES), 0))
                valid = row < rows_total
                x = jnp.where(valid, x, SENTINEL_LOGIT)   # select blocks NaN/garbage reads
                t = jnp.where(valid, t, 0.0)
            e = jnp.exp(-jnp.abs(x))                      # shared exp for stable BCE
            bce = jnp.maximum(x, 0.0) - x * t + jnp.log1p(e)
            p = 0.5 * jnp.tanh(0.5 * x) + 0.5             # sigmoid via a single EUP tanh
            return (bce_a + fold(bce), pt_a + fold(p * t),
                    p_a + fold(p), t_a + fold(t))

        zero = jnp.zeros((SUBLANES, LANES), jnp.float32)
        bce_a, pt_a, p_a, t_a = lax.fori_loop(
            0, num_chunks, body, (zero, zero, zero, zero), unroll=True)
        out_ref[0] += bce_a
        out_ref[1] += pt_a
        out_ref[2] += p_a
        out_ref[3] += t_a

    if not needs_mask:                         # static: every grid tile is fully in-bounds
        accumulate(masked=False)
    else:
        is_full = base_row + block_rows <= rows_total

        @pl.when(is_full)
        def _full():
            accumulate(masked=False)

        @pl.when(jnp.logical_not(is_full))
        def _partial():
            accumulate(masked=True)


def _partial_sums(x2d, t2d, rows_total, block_rows, num_groups, tiles_per_group):
    total_tiles = pl.cdiv(rows_total, block_rows)
    grid_tiles = num_groups * tiles_per_group
    needs_mask = grid_tiles * block_rows != rows_total
    last_tile = total_tiles - 1

    def in_index_map(g, t):
        tile = g * tiles_per_group + t
        if grid_tiles > total_tiles:           # clamp grid overhang to an in-bounds block
            tile = jnp.minimum(tile, last_tile)
        return (tile, 0)

    kernel = functools.partial(
        _combo_stats_kernel, rows_total=rows_total, block_rows=block_rows,
        tiles_per_group=tiles_per_group, needs_mask=needs_mask)

    partials = pl.pallas_call(
        kernel,
        out_shape=jax.ShapeDtypeStruct((num_groups * 4, SUBLANES, LANES), jnp.float32),
        grid_spec=pltpu.PrefetchScalarGridSpec(
            num_scalar_prefetch=0,
            grid=(num_groups, tiles_per_group),
            in_specs=[
                pl.BlockSpec((block_rows, LANES), in_index_map),
                pl.BlockSpec((block_rows, LANES), in_index_map),
            ],
            out_specs=pl.BlockSpec((4, SUBLANES, LANES), lambda g, t: (g, 0, 0)),
        ),
        compiler_params=pltpu.CompilerParams(
            dimension_semantics=("parallel", "arbitrary"),
            vmem_limit_bytes=VMEM_LIMIT_BYTES,
        ),
    )(x2d, t2d)

    # Tiny (num_groups*4, 8, 128) cross-group/lane reduce; fuses with the final loss formula.
    return partials.reshape(num_groups, 4, SUBLANES, LANES).sum(axis=(0, 2, 3))


def combo_loss(pred, target, weights=(0.3, 0.4, 0.3), smooth=1e-6):
    """weights[0]*BCEWithLogits(mean) + weights[1]*DiceLoss + weights[2]*IoULoss."""
    w0, w1, w2 = (float(w) for w in weights)
    smooth = float(smooth)

    n = pred.size
    x = pred.reshape(-1)     # native dtype; upcast happens in-register inside the kernel
    t = target.reshape(-1)

    # Lane alignment: n % 128 == 0 for typical NCHW segmentation tensors -> free reshape.
    # Otherwise pad (< 128 elems, but costs a copy) with a sentinel contributing ~0.
    rem = (-n) % LANES
    if rem:
        x = jnp.pad(x, (0, rem), constant_values=SENTINEL_LOGIT)
        t = jnp.pad(t, (0, rem), constant_values=0)
    rows_total = (n + rem) // LANES
    x2d = x.reshape(rows_total, LANES)
    t2d = t.reshape(rows_total, LANES)

    # Block sizing: ~2 MiB per input per grid step (4096 rows f32 / 8192 rows bf16), capped so
    # there are >= 2 tiles whenever possible (keeps the "parallel" group axis useful on a v7x
    # megacore). Always a multiple of CHUNK_ROWS so the inner fori_loop divides exactly.
    itemsize = max(x2d.dtype.itemsize, t2d.dtype.itemsize)
    max_rows = max(CHUNK_ROWS,
                   (TARGET_BLOCK_BYTES // (LANES * itemsize)) // CHUNK_ROWS * CHUNK_ROWS)
    half_rows = _round_up(pl.cdiv(rows_total, 2), CHUNK_ROWS)
    block_rows = min(max_rows, half_rows)

    total_tiles = pl.cdiv(rows_total, block_rows)
    num_groups = 2 if total_tiles >= 2 else 1
    tiles_per_group = pl.cdiv(total_tiles, num_groups)

    sums = _partial_sums(x2d, t2d, rows_total, block_rows, num_groups, tiles_per_group)
    bce_sum, inter, psum, tsum = sums[0], sums[1], sums[2], sums[3]

    bce_mean = bce_sum / jnp.float32(n)
    dice = 1.0 - (2.0 * inter + smooth) / (psum + tsum + smooth)
    iou = 1.0 - (inter + smooth) / (psum + tsum - inter + smooth)
    return w0 * bce_mean + w1 * dice + w2 * iou


def _combo_loss_ref(pred, target, weights=(0.3, 0.4, 0.3), smooth=1e-6):
    x = pred.reshape(-1).astype(jnp.float32)
    t = target.reshape(-1).astype(jnp.float32)
    bce = jnp.mean(jnp.maximum(x, 0.0) - x * t + jnp.log1p(jnp.exp(-jnp.abs(x))))
    p = jax.nn.sigmoid(x)
    inter = jnp.sum(p * t)
    psum, tsum = jnp.sum(p), jnp.sum(t)
    dice = 1.0 - (2.0 * inter + smooth) / (psum + tsum + smooth)
    iou = 1.0 - (inter + smooth) / (psum + tsum - inter + smooth)
    return weights[0] * bce + weights[1] * dice + weights[2] * iou


if __name__ == "__main__":
    key = jax.random.PRNGKey(0)

    def make(shape, dtype, k):
        k1, k2 = jax.random.split(k)
        pred = jax.random.normal(k1, shape, dtype=jnp.float32).astype(dtype)
        target = (jax.random.uniform(k2, shape) > 0.5).astype(dtype)
        return pred, target

    k0, k1, k2, k3 = jax.random.split(key, 4)

    # Primary small segmentation-style case (single partial tile -> masked path).
    pred, target = make((2, 4, 16, 16), jnp.float32, k0)
    loss = jax.block_until_ready(combo_loss(pred, target))
    ref = _combo_loss_ref(pred, target)
    assert jnp.allclose(loss, ref, rtol=1e-4, atol=1e-6), (loss, ref)

    # Two-tile case: mask-free fast path + 2-group 'parallel' axis + partial-tail tile.
    pred, target = make((2, 4, 64, 65), jnp.float32, k1)
    loss = jax.block_until_ready(combo_loss(pred, target))
    ref = _combo_loss_ref(pred, target)
    assert jnp.allclose(loss, ref, rtol=1e-4, atol=1e-6), (loss, ref)

    # n not a multiple of 128: exercises the sentinel-pad path.
    pred, target = make((3, 5, 7, 11), jnp.float32, k2)
    loss = jax.block_until_ready(combo_loss(pred, target))
    ref = _combo_loss_ref(pred, target)
    assert jnp.allclose(loss, ref, rtol=1e-4, atol=1e-6), (loss, ref)

    # bf16 inputs: native-dtype streaming with in-register upcast.
    pred, target = make((2, 4, 16, 16), jnp.bfloat16, k3)
    loss = jax.block_until_ready(combo_loss(pred, target))
    ref = _combo_loss_ref(pred, target)
    assert jnp.allclose(loss, ref, rtol=2e-4, atol=1e-5), (loss, ref)

    print("KERNEL_OK")
</pallas_src>

<mosaic_0001>
module attributes {stable_mosaic.version = 11 : i64} {
  func.func @_combo_stats_kernel(%arg0: i32, %arg1: i32, %arg2: memref<256x128xf32, #tpu.memory_space<vmem>>, %arg3: memref<256x128xf32, #tpu.memory_space<vmem>>, %arg4: memref<4x8x128xf32, #tpu.memory_space<vmem>>) attributes {dimension_semantics = [#tpu.dimension_semantics<parallel>, #tpu.dimension_semantics<arbitrary>], iteration_bounds = array<i64: 1, 1>, scalar_prefetch = 0 : i64, scratch_operands = 0 : i64, tpu.core_type = #tpu.core_type<tc>, window_params = [{transform_indices = @transform_0, window_bounds = array<i64: 256, 128>}, {transform_indices = @transform_1, window_bounds = array<i64: 256, 128>}, {transform_indices = @transform_2, window_bounds = array<i64: 4, 8, 128>}]} {
    %c0_i32 = arith.constant 0 : i32
    %0 = arith.cmpi eq, %arg1, %c0_i32 : i32
    %1 = arith.extui %0 : i1 to i32
    %c0_i32_0 = arith.constant 0 : i32
    %2 = arith.cmpi ne, %1, %c0_i32_0 : i32
    scf.if %2 {
      %cst = arith.constant 0.000000e+00 : f32
      %13 = vector.broadcast %cst : f32 to vector<4x8x128xf32>
      %c0 = arith.constant 0 : index
      %c0_4 = arith.constant 0 : index
      %c0_5 = arith.constant 0 : index
      %14 = vector.load %arg4[%c0, %c0_4, %c0_5] : memref<4x8x128xf32, #tpu.memory_space<vmem>>, vector<4x8x128xf32>
      tpu.vector_store %arg4[%c0, %c0_4, %c0_5], %13 {strides = array<i32>} : memref<4x8x128xf32, #tpu.memory_space<vmem>>, vector<4x8x128xf32>,
    } else {
    }
    %c1_i32 = arith.constant 1 : i32
    %3 = arith.muli %arg0, %c1_i32 : i32
    %4 = arith.addi %3, %arg1 : i32
    %c256_i32 = arith.constant 256 : i32
    %5 = arith.muli %4, %c256_i32 : i32
    %c256_i32_1 = arith.constant 256 : i32
    %6 = arith.addi %5, %c256_i32_1 : i32
    %c16_i32 = arith.constant 16 : i32
    %7 = arith.cmpi sle, %6, %c16_i32 : i32
    %8 = arith.extui %7 : i1 to i32
    %c0_i32_2 = arith.constant 0 : i32
    %9 = arith.cmpi ne, %8, %c0_i32_2 : i32
    scf.if %9 {
      %cst = arith.constant 0.000000e+00 : f32
      %13 = vector.broadcast %cst : f32 to vector<8x128xf32>
      %c0_i32_4 = arith.constant 0 : i32
      %c256_i32_5 = arith.constant 256 : i32
      %14 = arith.muli %c0_i32_4, %c256_i32_5 : i32
      %15 = tpu.assume_multiple %14, 256 : i32
      %16 = arith.index_cast %15 : i32 to index
      %c0 = arith.constant 0 : index
      %17 = vector.load %arg2[%16, %c0] : memref<256x128xf32, #tpu.memory_space<vmem>>, vector<256x128xf32>
      %18 = arith.index_cast %15 : i32 to index
      %c0_6 = arith.constant 0 : index
      %19 = vector.load %arg3[%18, %c0_6] : memref<256x128xf32, #tpu.memory_space<vmem>>, vector<256x128xf32>
      %20 = math.absf %17 : vector<256x128xf32>
      %cst_7 = arith.constant 0.000000e+00 : f32
      %21 = vector.broadcast %cst_7 : f32 to vector<256x128xf32>
      %22 = arith.subf %21, %20 : vector<256x128xf32>
      %23 = math.exp %22 : vector<256x128xf32>
      %cst_8 = arith.constant 0.000000e+00 : f32
      %24 = vector.broadcast %cst_8 : f32 to vector<256x128xf32>
      %25 = arith.maximumf %17, %24 : vector<256x128xf32>
      %26 = arith.mulf %17, %19 : vector<256x128xf32>
      %27 = arith.subf %25, %26 : vector<256x128xf32>
      %28 = math.log1p %23 : vector<256x128xf32>
      %29 = arith.addf %27, %28 : vector<256x128xf32>
      %cst_9 = arith.constant 5.000000e-01 : f32
      %30 = vector.broadcast %cst_9 : f32 to vector<256x128xf32>
      %31 = arith.mulf %30, %17 : vector<256x128xf32>
      %32 = math.tanh %31 : vector<256x128xf32>
      %cst_10 = arith.constant 5.000000e-01 : f32
      %33 = vector.broadcast %cst_10 : f32 to vector<256x128xf32>
      %34 = arith.mulf %33, %32 : vector<256x128xf32>
      %cst_11 = arith.constant 5.000000e-01 : f32
      %35 = vector.broadcast %cst_11 : f32 to vector<256x128xf32>
      %36 = arith.addf %34, %35 : vector<256x128xf32>
      %37 = vector.shape_cast %29 : vector<256x128xf32> to vector<32x8x128xf32>
      %cst_12 = arith.constant dense<0.000000e+00> : vector<8x128xf32>
      %38 = vector.multi_reduction <add>, %37, %cst_12 [0] : vector<32x8x128xf32> to vector<8x128xf32>
      %39 = arith.addf %13, %38 : vector<8x128xf32>
      %40 = arith.mulf %36, %19 : vector<256x128xf32>
      %41 = vector.shape_cast %40 : vector<256x128xf32> to vector<32x8x128xf32>
      %cst_13 = arith.constant dense<0.000000e+00> : vector<8x128xf32>
      %42 = vector.multi_reduction <add>, %41, %cst_13 [0] : vector<32x8x128xf32> to vector<8x128xf32>
      %43 = arith.addf %13, %42 : vector<8x128xf32>
      %44 = vector.shape_cast %36 : vector<256x128xf32> to vector<32x8x128xf32>
      %cst_14 = arith.constant dense<0.000000e+00> : vector<8x128xf32>
      %45 = vector.multi_reduction <add>, %44, %cst_14 [0] : vector<32x8x128xf32> to vector<8x128xf32>
      %46 = arith.addf %13, %45 : vector<8x128xf32>
      %47 = vector.shape_cast %19 : vector<256x128xf32> to vector<32x8x128xf32>
      %cst_15 = arith.constant dense<0.000000e+00> : vector<8x128xf32>
      %48 = vector.multi_reduction <add>, %47, %cst_15 [0] : vector<32x8x128xf32> to vector<8x128xf32>
      %49 = arith.addf %13, %48 : vector<8x128xf32>
      %c1_i32_16 = arith.constant 1 : i32
      %c0_17 = arith.constant 0 : index
      %c0_18 = arith.constant 0 : index
      %c0_19 = arith.constant 0 : index
      %50 = vector.load %arg4[%c0_17, %c0_18, %c0_19] : memref<4x8x128xf32, #tpu.memory_space<vmem>>, vector<1x8x128xf32>
      %51 = vector.shape_cast %50 : vector<1x8x128xf32> to vector<8x128xf32>
      %52 = arith.addf %51, %39 : vector<8x128xf32>
      %c0_20 = arith.constant 0 : index
      %c0_21 = arith.constant 0 : index
      %c0_22 = arith.constant 0 : index
      %53 = vector.load %arg4[%c0_20, %c0_21, %c0_22] : memref<4x8x128xf32, #tpu.memory_space<vmem>>, vector<1x8x128xf32>
      %54 = vector.shape_cast %53 : vector<1x8x128xf32> to vector<8x128xf32>
      %55 = vector.shape_cast %52 : vector<8x128xf32> to vector<1x8x128xf32>
      tpu.vector_store %arg4[%c0_20, %c0_21, %c0_22], %55 {strides = array<i32>} : memref<4x8x128xf32, #tpu.memory_space<vmem>>, vector<1x8x128xf32>,
      %c1 = arith.constant 1 : index
      %c0_23 = arith.constant 0 : index
      %c0_24 = arith.constant 0 : index
      %56 = vector.load %arg4[%c1, %c0_23, %c0_24] : memref<4x8x128xf32, #tpu.memory_space<vmem>>, vector<1x8x128xf32>
      %57 = vector.shape_cast %56 : vector<1x8x128xf32> to vector<8x128xf32>
      %58 = arith.addf %57, %43 : vector<8x128xf32>
      %c1_25 = arith.constant 1 : index
      %c0_26 = arith.constant 0 : index
      %c0_27 = arith.constant 0 : index
      %59 = vector.load %arg4[%c1_25, %c0_26, %c0_27] : memref<4x8x128xf32, #tpu.memory_space<vmem>>, vector<1x8x128xf32>
      %60 = vector.shape_cast %59 : vector<1x8x128xf32> to vector<8x128xf32>
      %61 = vector.shape_cast %58 : vector<8x128xf32> to vector<1x8x128xf32>
      tpu.vector_store %arg4[%c1_25, %c0_26, %c0_27], %61 {strides = array<i32>} : memref<4x8x128xf32, #tpu.memory_space<vmem>>, vector<1x8x128xf32>,
      %c2 = arith.constant 2 : index
      %c0_28 = arith.constant 0 : index
      %c0_29 = arith.constant 0 : index
      %62 = vector.load %arg4[%c2, %c0_28, %c0_29] : memref<4x8x128xf32, #tpu.memory_space<vmem>>, vector<1x8x128xf32>
      %63 = vector.shape_cast %62 : vector<1x8x128xf32> to vector<8x128xf32>
      %64 = arith.addf %63, %46 : vector<8x128xf32>
      %c2_30 = arith.constant 2 : index
      %c0_31 = arith.constant 0 : index
      %c0_32 = arith.constant 0 : index
      %65 = vector.load %arg4[%c2_30, %c0_31, %c0_32] : memref<4x8x128xf32, #tpu.memory_space<vmem>>, vector<1x8x128xf32>
      %66 = vector.shape_cast %65 : vector<1x8x128xf32> to vector<8x128xf32>
      %67 = vector.shape_cast %64 : vector<8x128xf32> to vector<1x8x128xf32>
      tpu.vector_store %arg4[%c2_30, %c0_31, %c0_32], %67 {strides = array<i32>} : memref<4x8x128xf32, #tpu.memory_space<vmem>>, vector<1x8x128xf32>,
      %c3 = arith.constant 3 : index
      %c0_33 = arith.constant 0 : index
      %c0_34 = arith.constant 0 : index
      %68 = vector.load %arg4[%c3, %c0_33, %c0_34] : memref<4x8x128xf32, #tpu.memory_space<vmem>>, vector<1x8x128xf32>
      %69 = vector.shape_cast %68 : vector<1x8x128xf32> to vector<8x128xf32>
      %70 = arith.addf %69, %49 : vector<8x128xf32>
      %c3_35 = arith.constant 3 : index
      %c0_36 = arith.constant 0 : index
      %c0_37 = arith.constant 0 : index
      %71 = vector.load %arg4[%c3_35, %c0_36, %c0_37] : memref<4x8x128xf32, #tpu.memory_space<vmem>>, vector<1x8x128xf32>
      %72 = vector.shape_cast %71 : vector<1x8x128xf32> to vector<8x128xf32>
      %73 = vector.shape_cast %70 : vector<8x128xf32> to vector<1x8x128xf32>
      tpu.vector_store %arg4[%c3_35, %c0_36, %c0_37], %73 {strides = array<i32>} : memref<4x8x128xf32, #tpu.memory_space<vmem>>, vector<1x8x128xf32>,
    } else {
    }
    %true = arith.constant true
    %10 = arith.xori %7, %true : i1
    %11 = arith.extui %10 : i1 to i32
    %c0_i32_3 = arith.constant 0 : i32
    %12 = arith.cmpi ne, %11, %c0_i32_3 : i32
    scf.if %12 {
      %cst = arith.constant 0.000000e+00 : f32
      %13 = vector.broadcast %cst : f32 to vector<8x128xf32>
      %c0_i32_4 = arith.constant 0 : i32
      %c256_i32_5 = arith.constant 256 : i32
      %14 = arith.muli %c0_i32_4, %c256_i32_5 : i32
      %15 = tpu.assume_multiple %14, 256 : i32
      %16 = arith.index_cast %15 : i32 to index
      %c0 = arith.constant 0 : index
      %17 = vector.load %arg2[%16, %c0] : memref<256x128xf32, #tpu.memory_space<vmem>>, vector<256x128xf32>
      %18 = arith.index_cast %15 : i32 to index
      %c0_6 = arith.constant 0 : index
      %19 = vector.load %arg3[%18, %c0_6] : memref<256x128xf32, #tpu.memory_space<vmem>>, vector<256x128xf32>
      %20 = arith.addi %5, %15 : i32
      %21 = tpu.iota {dimensions = array<i32: 0>} : vector<256x128xi32>
      %22 = vector.broadcast %20 : i32 to vector<256x128xi32>
      %23 = arith.addi %22, %21 : vector<256x128xi32>
      %c16_i32_7 = arith.constant 16 : i32
      %24 = vector.broadcast %c16_i32_7 : i32 to vector<256x128xi32>
      %25 = arith.cmpi slt, %23, %24 : vector<256x128xi32>
      %cst_8 = arith.constant -1.000000e+02 : f32
      %26 = vector.broadcast %cst_8 : f32 to vector<256x128xf32>
      %27 = arith.select %25, %17, %26 : vector<256x128xi1>, vector<256x128xf32>
      %cst_9 = arith.constant 0.000000e+00 : f32
      %28 = vector.broadcast %cst_9 : f32 to vector<256x128xf32>
      %29 = arith.select %25, %19, %28 : vector<256x128xi1>, vector<256x128xf32>
      %30 = math.absf %27 : vector<256x128xf32>
      %cst_10 = arith.constant 0.000000e+00 : f32
      %31 = vector.broadcast %cst_10 : f32 to vector<256x128xf32>
      %32 = arith.subf %31, %30 : vector<256x128xf32>
      %33 = math.exp %32 : vector<256x128xf32>
      %cst_11 = arith.constant 0.000000e+00 : f32
      %34 = vector.broadcast %cst_11 : f32 to vector<256x128xf32>
      %35 = arith.maximumf %27, %34 : vector<256x128xf32>
      %36 = arith.mulf %27, %29 : vector<256x128xf32>
      %37 = arith.subf %35, %36 : vector<256x128xf32>
      %38 = math.log1p %33 : vector<256x128xf32>
      %39 = arith.addf %37, %38 : vector<256x128xf32>
      %cst_12 = arith.constant 5.000000e-01 : f32
      %40 = vector.broadcast %cst_12 : f32 to vector<256x128xf32>
      %41 = arith.mulf %40, %27 : vector<256x128xf32>
      %42 = math.tanh %41 : vector<256x128xf32>
      %cst_13 = arith.constant 5.000000e-01 : f32
      %43 = vector.broadcast %cst_13 : f32 to vector<256x128xf32>
      %44 = arith.mulf %43, %42 : vector<256x128xf32>
      %cst_14 = arith.constant 5.000000e-01 : f32
      %45 = vector.broadcast %cst_14 : f32 to vector<256x128xf32>
      %46 = arith.addf %44, %45 : vector<256x128xf32>
      %47 = vector.shape_cast %39 : vector<256x128xf32> to vector<32x8x128xf32>
      %cst_15 = arith.constant dense<0.000000e+00> : vector<8x128xf32>
      %48 = vector.multi_reduction <add>, %47, %cst_15 [0] : vector<32x8x128xf32> to vector<8x128xf32>
      %49 = arith.addf %13, %48 : vector<8x128xf32>
      %50 = arith.mulf %46, %29 : vector<256x128xf32>
      %51 = vector.shape_cast %50 : vector<256x128xf32> to vector<32x8x128xf32>
      %cst_16 = arith.constant dense<0.000000e+00> : vector<8x128xf32>
      %52 = vector.multi_reduction <add>, %51, %cst_16 [0] : vector<32x8x128xf32> to vector<8x128xf32>
      %53 = arith.addf %13, %52 : vector<8x128xf32>
      %54 = vector.shape_cast %46 : vector<256x128xf32> to vector<32x8x128xf32>
      %cst_17 = arith.constant dense<0.000000e+00> : vector<8x128xf32>
      %55 = vector.multi_reduction <add>, %54, %cst_17 [0] : vector<32x8x128xf32> to vector<8x128xf32>
      %56 = arith.addf %13, %55 : vector<8x128xf32>
      %57 = vector.shape_cast %29 : vector<256x128xf32> to vector<32x8x128xf32>
      %cst_18 = arith.constant dense<0.000000e+00> : vector<8x128xf32>
      %58 = vector.multi_reduction <add>, %57, %cst_18 [0] : vector<32x8x128xf32> to vector<8x128xf32>
      %59 = arith.addf %13, %58 : vector<8x128xf32>
      %c1_i32_19 = arith.constant 1 : i32
      %c0_20 = arith.constant 0 : index
      %c0_21 = arith.constant 0 : index
      %c0_22 = arith.constant 0 : index
      %60 = vector.load %arg4[%c0_20, %c0_21, %c0_22] : memref<4x8x128xf32, #tpu.memory_space<vmem>>, vector<1x8x128xf32>
      %61 = vector.shape_cast %60 : vector<1x8x128xf32> to vector<8x128xf32>
      %62 = arith.addf %61, %49 : vector<8x128xf32>
      %c0_23 = arith.constant 0 : index
      %c0_24 = arith.constant 0 : index
      %c0_25 = arith.constant 0 : index
      %63 = vector.load %arg4[%c0_23, %c0_24, %c0_25] : memref<4x8x128xf32, #tpu.memory_space<vmem>>, vector<1x8x128xf32>
      %64 = vector.shape_cast %63 : vector<1x8x128xf32> to vector<8x128xf32>
      %65 = vector.shape_cast %62 : vector<8x128xf32> to vector<1x8x128xf32>
      tpu.vector_store %arg4[%c0_23, %c0_24, %c0_25], %65 {strides = array<i32>} : memref<4x8x128xf32, #tpu.memory_space<vmem>>, vector<1x8x128xf32>,
      %c1 = arith.constant 1 : index
      %c0_26 = arith.constant 0 : index
      %c0_27 = arith.constant 0 : index
      %66 = vector.load %arg4[%c1, %c0_26, %c0_27] : memref<4x8x128xf32, #tpu.memory_space<vmem>>, vector<1x8x128xf32>
      %67 = vector.shape_cast %66 : vector<1x8x128xf32> to vector<8x128xf32>
      %68 = arith.addf %67, %53 : vector<8x128xf32>
      %c1_28 = arith.constant 1 : index
      %c0_29 = arith.constant 0 : index
      %c0_30 = arith.constant 0 : index
      %69 = vector.load %arg4[%c1_28, %c0_29, %c0_30] : memref<4x8x128xf32, #tpu.memory_space<vmem>>, vector<1x8x128xf32>
      %70 = vector.shape_cast %69 : vector<1x8x128xf32> to vector<8x128xf32>
      %71 = vector.shape_cast %68 : vector<8x128xf32> to vector<1x8x128xf32>
      tpu.vector_store %arg4[%c1_28, %c0_29, %c0_30], %71 {strides = array<i32>} : memref<4x8x128xf32, #tpu.memory_space<vmem>>, vector<1x8x128xf32>,
      %c2 = arith.constant 2 : index
      %c0_31 = arith.constant 0 : index
      %c0_32 = arith.constant 0 : index
      %72 = vector.load %arg4[%c2, %c0_31, %c0_32] : memref<4x8x128xf32, #tpu.memory_space<vmem>>, vector<1x8x128xf32>
      %73 = vector.shape_cast %72 : vector<1x8x128xf32> to vector<8x128xf32>
      %74 = arith.addf %73, %56 : vector<8x128xf32>
      %c2_33 = arith.constant 2 : index
      %c0_34 = arith.constant 0 : index
      %c0_35 = arith.constant 0 : index
      %75 = vector.load %arg4[%c2_33, %c0_34, %c0_35] : memref<4x8x128xf32, #tpu.memory_space<vmem>>, vector<1x8x128xf32>
      %76 = vector.shape_cast %75 : vector<1x8x128xf32> to vector<8x128xf32>
      %77 = vector.shape_cast %74 : vector<8x128xf32> to vector<1x8x128xf32>
      tpu.vector_store %arg4[%c2_33, %c0_34, %c0_35], %77 {strides = array<i32>} : memref<4x8x128xf32, #tpu.memory_space<vmem>>, vector<1x8x128xf32>,
      %c3 = arith.constant 3 : index
      %c0_36 = arith.constant 0 : index
      %c0_37 = arith.constant 0 : index
      %78 = vector.load %arg4[%c3, %c0_36, %c0_37] : memref<4x8x128xf32, #tpu.memory_space<vmem>>, vector<1x8x128xf32>
      %79 = vector.shape_cast %78 : vector<1x8x128xf32> to vector<8x128xf32>
      %80 = arith.addf %79, %59 : vector<8x128xf32>
      %c3_38 = arith.constant 3 : index
      %c0_39 = arith.constant 0 : index
      %c0_40 = arith.constant 0 : index
      %81 = vector.load %arg4[%c3_38, %c0_39, %c0_40] : memref<4x8x128xf32, #tpu.memory_space<vmem>>, vector<1x8x128xf32>
      %82 = vector.shape_cast %81 : vector<1x8x128xf32> to vector<8x128xf32>
      %83 = vector.shape_cast %80 : vector<8x128xf32> to vector<1x8x128xf32>
      tpu.vector_store %arg4[%c3_38, %c0_39, %c0_40], %83 {strides = array<i32>} : memref<4x8x128xf32, #tpu.memory_space<vmem>>, vector<1x8x128xf32>,
    } else {
    }
    return
  }
  func.func @transform_0(%arg0: i32, %arg1: i32) -> (i32, i32) {
    %c1_i32 = arith.constant 1 : i32
    %0 = arith.muli %arg0, %c1_i32 : i32
    %1 = arith.addi %0, %arg1 : i32
    %c0_i32 = arith.constant 0 : i32
    %c0_i32_0 = arith.constant 0 : i32
    return %1, %c0_i32 : i32, i32
  }
  func.func @transform_1(%arg0: i32, %arg1: i32) -> (i32, i32) {
    %c1_i32 = arith.constant 1 : i32
    %0 = arith.muli %arg0, %c1_i32 : i32
    %1 = arith.addi %0, %arg1 : i32
    %c0_i32 = arith.constant 0 : i32
    %c0_i32_0 = arith.constant 0 : i32
    return %1, %c0_i32 : i32, i32
  }
  func.func @transform_2(%arg0: i32, %arg1: i32) -> (i32, i32, i32) {
    %c0_i32 = arith.constant 0 : i32
    %c0_i32_0 = arith.constant 0 : i32
    %c0_i32_1 = arith.constant 0 : i32
    return %arg0, %c0_i32, %c0_i32_0 : i32, i32, i32
  }
}

</mosaic_0001>

<bundles_post_ra>
// kernel: tpu_custom_call.1
= control target key start
LH: loop header
LB: loop body
LE: loop exit
PB: predicated region body
PF: predicated region fallthrough
CT: control target
= control target key end

     0   :  { %7 = vsyncpa [#allocation3], 0  ;;  %s2241_s0 = inlined_call_operand.hbm [shape: f32[16,128], index: 0, kind: input, shape index: {}]   ;;  %s2242_s1 = inlined_call_operand.hbm [shape: f32[16,128], index: 1, kind: input, shape index: {}]   ;;  %s2243_s2 = inlined_call_operand.hbm [shape: f32[4,8,128], index: 2, kind: output, shape index: {}]  }
   0x1   :  { %8 = vsyncpa [#allocation6], 0 }
   0x2   :  { %9 = vsyncpa [#allocation4], 0 }
   0x3   :  { %18 = vsyncadd [#allocation3], 3840  ;;  %s2176_s9 = smov [#allocation2]   ;;  %s2104_s13 = scalar_lea.hbm %s2241_s0, 256 }
   0x4   :  { %s23_s10 = sshll.u32 %s2176_s9, 4  ;;  %p2105_p0 = scmp.ne.s32.totalorder %s2241_s0, %s2104_s13  ;;  %s24_s10 = int_to_ptr.vmem [resolvable:$true] %s23_s10 }
   0x5   :  { %p2108_p1 = scmp.lt.u32.totalorder %s2104_s13, %s2241_s0 }
   0x7   :  { %p2110_p2 = pnand %p2108_p1, %p2105_p0 }
   0x9   :  { %2113 = shalt.err (!%p2110_p2)
}
   0xa   :  { %s2114_s18 = scalar_lea.vmem %s24_s10, 256  ;;  %s2118_s19 = scalar_lea.vmem %s24_s10, 4096 }
   0xb   :  { %p2115_p3 = scmp.ne.s32.totalorder %s24_s10, %s2114_s18  ;;  %p2119_p4 = scmp.lt.s32.totalorder %s24_s10, %s24_s10 }
   0xc   :  { %p2120_p5 = scmp.lt.s32.totalorder %s2118_s19, %s2114_s18 }
   0xe   :  { %p2121_p6 = por %p2120_p5, %p2119_p4 }
  0x10   :  { %p2122_p7 = pnand %p2121_p6, %p2115_p3 }
  0x12   :  { %2125 = shalt.err (!%p2122_p7)
}
  0x13   :  { %s2177_s20 = smov 128   ;;  %s2178_s21 = smov 8  }
  0x14   :  { %29 = dma.hbm_to_vmem [thread:$0]  %s2241_s0, 256, %s24_s10, [#allocation3], %s2177_s20, %s2177_s20, %s2178_s21  }
  0x15   :  { %38 = vsyncadd [#allocation6], 3840  ;;  %s2179_s24 = smov [#allocation5]   ;;  %s2126_s28 = scalar_lea.hbm %s2242_s1, 256 }
  0x16   :  { %s43_s25 = sshll.u32 %s2179_s24, 4  ;;  %p2127_p8 = scmp.ne.s32.totalorder %s2242_s1, %s2126_s28  ;;  %s44_s25 = int_to_ptr.vmem [resolvable:$true] %s43_s25 }
  0x17   :  { %p2130_p9 = scmp.lt.u32.totalorder %s2126_s28, %s2242_s1 }
  0x19   :  { %p2132_p10 = pnand %p2130_p9, %p2127_p8 }
  0x1b   :  { %2135 = shalt.err (!%p2132_p10)
}
  0x1c   :  { %s2136_s5 = scalar_lea.vmem %s44_s25, 256  ;;  %s2140_s0 = scalar_lea.vmem %s44_s25, 4096 }
  0x1d   :  { %p2137_p11 = scmp.ne.s32.totalorder %s44_s25, %s2136_s5  ;;  %p2141_p12 = scmp.lt.s32.totalorder %s44_s25, %s44_s25 }
  0x1e   :  { %p2142_p13 = scmp.lt.s32.totalorder %s2140_s0, %s2136_s5 }
  0x20   :  { %p2143_p0 = por %p2142_p13, %p2141_p12 }
  0x22   :  { %p2144_p1 = pnand %p2143_p0, %p2137_p11 }
  0x24   :  { %2147 = shalt.err (!%p2144_p1)
}
  0x25   :  { %49 = dma.hbm_to_vmem [thread:$0]  %s2242_s1, 256, %s44_s25, [#allocation6], %s2177_s20, %s2177_s20, %s2178_s21  }
  0x26   :  { %2170 = dma.done.wait [#allocation3], 4096  }
  0x27   :  { %2171 = vsyncadd [#allocation3], 4294963200 }
  0x28   :  { %2172 = dma.done.wait [#allocation6], 4096  }
  0x29   :  { %2173 = vsyncadd [#allocation6], 4294963200  ;;  %v994_v0 = vld [vmem:[#allocation2] sm:$0xff]  ;;  %v995_v1 = vld [vmem:[#allocation2 + $0x8] sm:$0xff]  ;;  %s2180_s1 = smov [#allocation7]  }
  0x2a   :  { %v1221_v2 = vand.u32 2147483647, %v994_v0  ;;  %v1222_v3 = vand.u32 2147483647, %v995_v1  ;;  %v1026_v4 = vld [vmem:[#allocation5] sm:$0xff]  ;;  %v1027_v5 = vld [vmem:[#allocation5 + $0x8] sm:$0xff] }
  0x2b   :  { %v1765_v6 = vmul.f32 0.5, %v994_v0  ;;  %v1766_v7 = vmul.f32 0.5, %v995_v1  ;;  %v2021_v10 = vadd.f32 %v1027_v5, %v1026_v4  ;;  %v1349_v30 = vmax.f32 %v994_v0, 0.0  ;;  %s2073_s8 = sshll.u32 %s2180_s1, 4  ;;  %s2074_s8 = int_to_ptr.vmem [resolvable:$true] %s2073_s8 }
  0x2c   :  { %v1253_v8 = vsub.f32 0.0, %v1221_v2  ;;  %v1254_v9 = vsub.f32 0.0, %v1222_v3  ;;  %v1381_v31 = vmul.f32 %v1026_v4, %v994_v0  ;;  %v1350_v34 = vmax.f32 %v995_v1, 0.0  ;;  %s2148_s9 = scalar_lea.vmem %s2074_s8, 512  ;;  %p2153_p3 = scmp.lt.s32.totalorder %s2074_s8, %s2074_s8 }
  0x2d   :  { %2092 = vtanh.f32 %v1765_v6  ;;  %2067 = vst [vmem:[#allocation7 + $0x18] sm:$0xff] %v2021_v10  ;;  %v1382_v35 = vmul.f32 %v1027_v5, %v995_v1  ;;  %p2149_p2 = scmp.ne.s32.totalorder %s2074_s8, %s2148_s9  ;;  %p2154_p4 = scmp.lt.s32.totalorder %s2148_s9, %s2148_s9 }
  0x2e   :  { %v1285_v11 = vmul.f32 1.442695, %v1253_v8  ;;  %v1287_v12 = vmul.f32 1.442695, %v1254_v9  ;;  %2094 = vtanh.f32 %v1766_v7  ;;  %v1413_v39 = vsub.f32 %v1349_v30, %v1381_v31 }
  0x2f   :  { %v1414_v42 = vsub.f32 %v1350_v34, %v1382_v35  ;;  %p2155_p5 = por %p2154_p4, %p2153_p3 }
  0x30   :  { %2096 = vpow2.f32 %v1285_v11 }
  0x31   :  { %2098 = vpow2.f32 %v1287_v12  ;;  %p2156_p6 = pnand %p2155_p5, %p2149_p2 }
  0x37   :  { %v2093_v13 = vpop.eup %2092 }
  0x38   :  { %v2095_v14 = vpop.eup %2094  ;;  %v1829_v15 = vmul.f32 0.5, %v2093_v13 }
  0x39   :  { %v1830_v16 = vmul.f32 0.5, %v2095_v14 }
  0x3a   :  { %v2097_v17 = vpop.eup %2096  ;;  %v1861_v18 = vadd.f32 0.5, %v1829_v15 }
  0x3b   :  { %v2099_v19 = vpop.eup %2098  ;;  %v1445_v20 = vadd.f32 1.0, %v2097_v17  ;;  %v1862_v21 = vadd.f32 0.5, %v1830_v16  ;;  %v1448_v25 = vmul.f32 -0.5, %v2097_v17  ;;  %v1451_v32 = vand.u32 2147483647, %v2097_v17 }
  0x3c   :  { %v1454_v22 = vadd.f32 1.0, %v2099_v19  ;;  %v1925_v23 = vmul.f32 %v1861_v18, %v1026_v4  ;;  %v1457_v27 = vmul.f32 -0.5, %v2099_v19  ;;  %v1460_v36 = vand.u32 2147483647, %v2099_v19 }
  0x3d   :  { %2100 = vlog2.f32 %v1445_v20  ;;  %v1926_v24 = vmul.f32 %v1862_v21, %v1027_v5  ;;  %v1989_v26 = vadd.f32 %v1862_v21, %v1861_v18  ;;  %v1449_v29 = vadd.f32 1.0, %v1448_v25 }
  0x3e   :  { %2102 = vlog2.f32 %v1454_v22  ;;  %v1458_v33 = vadd.f32 1.0, %v1457_v27  ;;  %vm1452_vm0 = vcmp.lt.f32.partialorder %v1451_v32, 0.0004427343  ;;  %vm1461_vm1 = vcmp.lt.f32.partialorder %v1460_v36, 0.0004427343 }
  0x3f   :  { %v1957_v28 = vadd.f32 %v1926_v24, %v1925_v23  ;;  %2063 = vst [vmem:[#allocation7 + $0x10] sm:$0xff] %v1989_v26  ;;  %v1450_v37 = vmul.f32 %v2097_v17, %v1449_v29 }
  0x40   :  { %v1459_v40 = vmul.f32 %v2099_v19, %v1458_v33 }
  0x41   :  { %2059 = vst [vmem:[#allocation7 + $0x8] sm:$0xff] %v1957_v28 }
  0x47   :  { %v2101_v38 = vpop.eup %2100 }
  0x48   :  { %v2103_v41 = vpop.eup %2102  ;;  %v1447_v43 = vmul.f32 0.6931472, %v2101_v38 }
  0x49   :  { %v1456_v44 = vmul.f32 0.6931472, %v2103_v41 }
  0x4a   :  { %v1453_v45 = vsel %vm1452_vm0, %v1450_v37, %v1447_v43 }
  0x4b   :  { %v1462_v46 = vsel %vm1461_vm1, %v1459_v40, %v1456_v44  ;;  %v1733_v47 = vadd.f32 %v1453_v45, %v1413_v39 }
  0x4c   :  { %v1734_v48 = vadd.f32 %v1462_v46, %v1414_v42 }
  0x4e   :  { %v1893_v49 = vadd.f32 %v1734_v48, %v1733_v47 }
  0x50   :  { %2055 = vst [vmem:[#allocation7] sm:$0xff] %v1893_v49 }
  0x51   :  { %2159 = shalt.err (!%p2156_p6)
}
  0x52   :  { %s2160_s12 = scalar_lea.hbm %s2243_s2, 512 }
  0x53   :  { %p2161_p7 = scmp.ne.s32.totalorder %s2243_s2, %s2160_s12  ;;  %p2164_p8 = scmp.lt.u32.totalorder %s2160_s12, %s2243_s2 }
  0x55   :  { %p2166_p9 = pnand %p2164_p8, %p2161_p7 }
  0x57   :  { %2169 = shalt.err (!%p2166_p9)
}
  0x58   :  { %2079 = dma.vmem_to_hbm [thread:$0]  %s2074_s8, 512, %s2243_s2, [#allocation4], %s2177_s20, %s2177_s20, %s2178_s21  }
  0x59   :  { %2174 = dma.done.wait [#allocation4], 512  }
  0x5a   :  { %2175 = vsyncadd [#allocation4], 4294966784 }
  0x5b   :  { %2083 = vsyncpa [#allocation3], 1 }
  0x5c   :  { %2084 = vsyncpa [#allocation6], 1 }
  0x5d   :  { %2085 = vsyncpa [#allocation4], 1 }

</bundles_post_ra>
